<compile_context>
chip_gen: v7x
topology: tpu7x:2x2x1
jax: 0.10.0
libtpu: 0.0.40
codegen_flags: <defaults>
</compile_context>

<pallas_src>
import functools
from itertools import combinations

import numpy as np
import jax
import jax.numpy as jnp
from jax import lax
from jax.experimental import pallas as pl
from jax.experimental.pallas import tpu as pltpu


# --------------------------------------------------------------------------
# Pallas kernel: SimCLR (forward2) loss summed over ALL manifold pairs.
# --------------------------------------------------------------------------
def _simclr_allpairs_kernel(reps_ref, sqc_ref, sqr_ref, o_ref, *,
                            pairs, bsz, temperature, base_temperature):
    n = 2 * bsz
    inv_t = 1.0 / temperature

    # Off-diagonal mask for a [bsz, bsz] block — identical for every pair and
    # both diagonal blocks, so it is built once (hoisted out of the loop).
    rows = lax.broadcasted_iota(jnp.int32, (bsz, bsz), 0)
    cols = lax.broadcasted_iota(jnp.int32, (bsz, bsz), 1)
    off_diag = (rows != cols).astype(jnp.float32)

    def block_logits(g, sq_c, sq_r, mask):
        # dist[i,j] = ||x_i - y_j||; logits stabilized by the exact row max 1/t
        # (diagonal, dist == 0), so logits = (1/(1+dist) - 1)/t.
        d2 = jnp.maximum(sq_c + sq_r - 2.0 * g, 0.0)
        dist = jnp.sqrt(d2)
        l = (pl.reciprocal(1.0 + dist, approx=True) - 1.0) * inv_t
        if mask is not None:
            l = l * mask          # force the diagonal to exactly 0
        return l

    total = jnp.float32(0.0)
    for a, b in pairs:            # static, unrolled at trace time
        za = reps_ref[a]          # [bsz, D]   native dtype
        zb = reps_ref[b]
        sqa_c, sqb_c = sqc_ref[a], sqc_ref[b]      # [bsz, 1] f32 (precomputed)
        sqa_r, sqb_r = sqr_ref[a], sqr_ref[b]      # [1, bsz] f32 (precomputed)

        # Gram blocks on the MXU with f32 accumulation (contract dim 1 of both
        # operands — native transposed-RHS form, bf16-friendly).
        dims = (((1,), (1,)), ((), ()))
        g_aa = lax.dot_general(za, za, dims, preferred_element_type=jnp.float32)
        g_bb = lax.dot_general(zb, zb, dims, preferred_element_type=jnp.float32)
        g_ab = lax.dot_general(za, zb, dims, preferred_element_type=jnp.float32)

        l_aa = block_logits(g_aa, sqa_c, sqa_r, off_diag)
        l_bb = block_logits(g_bb, sqb_c, sqb_r, off_diag)
        l_ab = block_logits(g_ab, sqa_c, sqb_r, None)   # ba block = ab^T

        e_aa = jnp.exp(l_aa)
        e_bb = jnp.exp(l_bb)
        e_ab = jnp.exp(l_ab)

        # Row denominators; the -1 removes the masked diagonal's exp(0) = 1.
        den_top = (jnp.sum(e_aa, axis=1, keepdims=True)
                   + jnp.sum(e_ab, axis=1, keepdims=True) - 1.0)    # [bsz,1]
        # Bottom-half rows: bb is symmetric and rowsum(exp(L_ba)) = colsum(e_ab).
        den_bot = (jnp.sum(e_bb, axis=0, keepdims=True)
                   + jnp.sum(e_ab, axis=0, keepdims=True) - 1.0)    # [1,bsz]

        total_l = jnp.sum(l_aa) + jnp.sum(l_bb) + 2.0 * jnp.sum(l_ab)
        sum_log_den = jnp.sum(jnp.log(den_top)) + jnp.sum(jnp.log(den_bot))

        # loss_pair = -(t/bt)/N * sum_i (rowsum(L)_i - (N-1)*log_den_i)/(N-1)
        loss_pair = (-(temperature / base_temperature) / (n * (n - 1))) * (
            total_l - (n - 1) * sum_log_den)
        total = total + loss_pair

    # Lane-dense (8,128) unmasked store of the scalar; wrapper reads [0, 0].
    o_ref[...] = jnp.full(o_ref.shape, total, dtype=o_ref.dtype)


# --------------------------------------------------------------------------
# CrossManifoldSimCLRLoss.forward — single pallas_call, single grid step.
# --------------------------------------------------------------------------
def cross_manifold_simclr_loss(exp_dt_all, labels, mask=None,
                               temperature=0.1, contrast_mode='all',
                               base_temperature=0.1):
    del labels, mask, contrast_mode   # see semantics note at top of file
    n_man = len(exp_dt_all) - 1
    indices = np.linspace(0, n_man, n_man + 1, dtype=int)
    pairs = [(int(a), int(b)) for a, b in combinations(indices, 2)]

    n_rep = n_man + 1
    bsz = int(exp_dt_all[0].shape[0])
    d_max = max(int(r.shape[1]) for r in exp_dt_all)
    d_pad = ((d_max + 127) // 128) * 128          # lane-aligned feature dim
    dtype = jnp.result_type(*[r.dtype for r in exp_dt_all])

    # Zero-padding beyond each pair's own max feature dim does not change any
    # pairwise distance, so a single global Dpad is numerically equivalent.
    reps = jnp.stack(
        [jnp.pad(r.astype(dtype), ((0, 0), (0, d_pad - int(r.shape[1]))))
         for r in exp_dt_all], axis=0)            # [n_rep, bsz, Dpad]

    # Per-manifold squared norms (pair independent), both layouts.
    sq = jnp.sum(jnp.square(reps.astype(jnp.float32)), axis=-1)   # [n_rep,bsz]
    sq_col = sq[:, :, None]                       # [n_rep, bsz, 1]
    sq_row = sq[:, None, :]                       # [n_rep, 1, bsz]

    kernel = functools.partial(
        _simclr_allpairs_kernel, pairs=pairs, bsz=bsz,
        temperature=float(temperature),
        base_temperature=float(base_temperature))

    # Explicit VMEM budget: resident inputs (x2 headroom for buffering) plus
    # the per-pair [bsz,bsz] f32 temporaries and the output tile.
    itemsize = jnp.dtype(dtype).itemsize
    work = (2 * n_rep * bsz * d_pad * itemsize
            + 4 * n_rep * bsz * 4
            + 12 * bsz * bsz * 4
            + 4 * 8 * 128 * 4)
    vmem_limit = int(min(100 * 2**20, max(32 * 2**20, 2 * work)))

    out = pl.pallas_call(
        kernel,
        out_shape=jax.ShapeDtypeStruct((8, 128), jnp.float32),
        grid=(1,),
        in_specs=[
            pl.BlockSpec((n_rep, bsz, d_pad), lambda i: (0, 0, 0)),
            pl.BlockSpec((n_rep, bsz, 1), lambda i: (0, 0, 0)),
            pl.BlockSpec((n_rep, 1, bsz), lambda i: (0, 0, 0)),
        ],
        out_specs=pl.BlockSpec((8, 128), lambda i: (0, 0)),
        compiler_params=pltpu.CompilerParams(
            dimension_semantics=("arbitrary",),
            vmem_limit_bytes=vmem_limit),
    )(reps, sq_col, sq_row)

    return out[0, 0]


# --------------------------------------------------------------------------
# Pure-JAX reference (mirrors the PyTorch forward2 arithmetic directly)
# --------------------------------------------------------------------------
def _ref_pair_loss(z, temperature=0.1, base_temperature=0.1):
    n = z.shape[0]
    dist = jnp.linalg.norm(z[:, None, :] - z[None, :, :], axis=-1)
    logits_raw = (1.0 / (1.0 + dist)) / temperature
    logits = logits_raw - jnp.max(logits_raw, axis=1, keepdims=True)
    off = 1.0 - jnp.eye(n, dtype=jnp.float32)
    exp_l = jnp.exp(logits) * off
    log_prob = logits - jnp.log(exp_l.sum(1, keepdims=True))
    mlpp = (off * log_prob).sum(1) / off.sum(1)
    return -(temperature / base_temperature) * mlpp.mean()


def _ref_cross_manifold(exp_dt_all, temperature=0.1, base_temperature=0.1):
    n_man = len(exp_dt_all) - 1
    pairs = list(combinations(range(n_man + 1), 2))
    total = 0.0
    for a, b in pairs:
        rep1, rep2 = exp_dt_all[a], exp_dt_all[b]
        max_size = max(rep1.shape[1], rep2.shape[1])
        if rep1.shape[1] < max_size:
            rep1 = jnp.pad(rep1, ((0, 0), (0, max_size - rep1.shape[1])))
        elif rep2.shape[1] < max_size:
            rep2 = jnp.pad(rep2, ((0, 0), (0, max_size - rep2.shape[1])))
        z = jnp.concatenate([rep1, rep2], axis=0).astype(jnp.float32)
        total = total + _ref_pair_loss(z, temperature, base_temperature)
    return total


if __name__ == "__main__":
    key = jax.random.PRNGKey(0)
    k0, k1, k2, kl = jax.random.split(key, 4)

    bsz = 8
    # three manifold representations with different feature dims
    exp_dt_all = [
        jax.random.normal(k0, (bsz, 16), dtype=jnp.float32),
        jax.random.normal(k1, (bsz, 32), dtype=jnp.float32),
        jax.random.normal(k2, (bsz, 24), dtype=jnp.float32),
    ]
    labels = jax.random.randint(kl, (bsz,), 0, 4)

    loss = cross_manifold_simclr_loss(exp_dt_all, labels)
    loss = jax.block_until_ready(loss)

    ref = jax.block_until_ready(_ref_cross_manifold(exp_dt_all))
    assert np.isfinite(float(loss))
    # Tolerance relaxed vs v2 because pl.reciprocal(approx=True) is now the
    # dominant (and only) intentional numerical deviation from the reference.
    assert abs(float(loss) - float(ref)) < max(2e-2, 3e-3 * abs(float(ref))), \
        (float(loss), float(ref))

    print("KERNEL_OK")
</pallas_src>

<mosaic_0001>
module attributes {stable_mosaic.version = 11 : i64} {
  func.func @_simclr_allpairs_kernel(%arg0: i32, %arg1: memref<3x8x128xf32, #tpu.memory_space<vmem>>, %arg2: memref<3x8x1xf32, #tpu.memory_space<vmem>>, %arg3: memref<3x1x8xf32, #tpu.memory_space<vmem>>, %arg4: memref<8x128xf32, #tpu.memory_space<vmem>>) attributes {dimension_semantics = [#tpu.dimension_semantics<arbitrary>], iteration_bounds = array<i64: 1>, scalar_prefetch = 0 : i64, scratch_operands = 0 : i64, tpu.core_type = #tpu.core_type<tc>, window_params = [{pipeline_mode = #tpu.pipeline_mode<synchronous>, transform_indices = @transform_0, window_bounds = array<i64: 3, 8, 128>}, {pipeline_mode = #tpu.pipeline_mode<synchronous>, transform_indices = @transform_1, window_bounds = array<i64: 3, 8, 1>}, {pipeline_mode = #tpu.pipeline_mode<synchronous>, transform_indices = @transform_2, window_bounds = array<i64: 3, 1, 8>}, {pipeline_mode = #tpu.pipeline_mode<synchronous>, transform_indices = @transform_3, window_bounds = array<i64: 8, 128>}]} {
    %0 = tpu.iota {dimensions = array<i32: 0>} : vector<8x8xi32>
    %1 = tpu.iota {dimensions = array<i32: 1>} : vector<8x8xi32>
    %2 = arith.cmpi ne, %0, %1 : vector<8x8xi32>
    %3 = arith.extui %2 : vector<8x8xi1> to vector<8x8xi32>
    %4 = arith.sitofp %3 : vector<8x8xi32> to vector<8x8xf32>
    %c0 = arith.constant 0 : index
    %c0_0 = arith.constant 0 : index
    %c0_1 = arith.constant 0 : index
    %5 = vector.load %arg1[%c0, %c0_0, %c0_1] : memref<3x8x128xf32, #tpu.memory_space<vmem>>, vector<1x8x128xf32>
    %6 = vector.shape_cast %5 : vector<1x8x128xf32> to vector<8x128xf32>
    %c1 = arith.constant 1 : index
    %c0_2 = arith.constant 0 : index
    %c0_3 = arith.constant 0 : index
    %7 = vector.load %arg1[%c1, %c0_2, %c0_3] : memref<3x8x128xf32, #tpu.memory_space<vmem>>, vector<1x8x128xf32>
    %8 = vector.shape_cast %7 : vector<1x8x128xf32> to vector<8x128xf32>
    %c0_4 = arith.constant 0 : index
    %c0_5 = arith.constant 0 : index
    %c0_6 = arith.constant 0 : index
    %9 = vector.load %arg2[%c0_4, %c0_5, %c0_6] : memref<3x8x1xf32, #tpu.memory_space<vmem>>, vector<1x8x1xf32>
    %10 = vector.shape_cast %9 : vector<1x8x1xf32> to vector<8x1xf32>
    %c1_7 = arith.constant 1 : index
    %c0_8 = arith.constant 0 : index
    %c0_9 = arith.constant 0 : index
    %11 = vector.load %arg2[%c1_7, %c0_8, %c0_9] : memref<3x8x1xf32, #tpu.memory_space<vmem>>, vector<1x8x1xf32>
    %12 = vector.shape_cast %11 : vector<1x8x1xf32> to vector<8x1xf32>
    %c0_10 = arith.constant 0 : index
    %c0_11 = arith.constant 0 : index
    %c0_12 = arith.constant 0 : index
    %13 = vector.load %arg3[%c0_10, %c0_11, %c0_12] : memref<3x1x8xf32, #tpu.memory_space<vmem>>, vector<1x1x8xf32>
    %14 = vector.shape_cast %13 : vector<1x1x8xf32> to vector<1x8xf32>
    %c1_13 = arith.constant 1 : index
    %c0_14 = arith.constant 0 : index
    %c0_15 = arith.constant 0 : index
    %15 = vector.load %arg3[%c1_13, %c0_14, %c0_15] : memref<3x1x8xf32, #tpu.memory_space<vmem>>, vector<1x1x8xf32>
    %16 = vector.shape_cast %15 : vector<1x1x8xf32> to vector<1x8xf32>
    %cst = arith.constant dense<0.000000e+00> : vector<8x8xf32>
    %17 = tpu.matmul %6, %6, %cst {dimension_numbers = #tpu.dot_dimension_numbers<[1], [1], [0], [0], [0, 0, 1, 0], [], []>} : vector<8x128xf32>, vector<8x128xf32>, vector<8x8xf32> -> vector<8x8xf32>
    %cst_16 = arith.constant dense<0.000000e+00> : vector<8x8xf32>
    %18 = tpu.matmul %8, %8, %cst_16 {dimension_numbers = #tpu.dot_dimension_numbers<[1], [1], [0], [0], [0, 0, 1, 0], [], []>} : vector<8x128xf32>, vector<8x128xf32>, vector<8x8xf32> -> vector<8x8xf32>
    %cst_17 = arith.constant dense<0.000000e+00> : vector<8x8xf32>
    %19 = tpu.matmul %6, %8, %cst_17 {dimension_numbers = #tpu.dot_dimension_numbers<[1], [1], [0], [0], [0, 0, 1, 0], [], []>} : vector<8x128xf32>, vector<8x128xf32>, vector<8x8xf32> -> vector<8x8xf32>
    %20 = vector.broadcast %10 : vector<8x1xf32> to vector<8x8xf32>
    %21 = vector.broadcast %14 : vector<1x8xf32> to vector<8x8xf32>
    %22 = arith.addf %20, %21 : vector<8x8xf32>
    %cst_18 = arith.constant 2.000000e+00 : f32
    %23 = vector.broadcast %cst_18 : f32 to vector<8x8xf32>
    %24 = arith.mulf %23, %17 : vector<8x8xf32>
    %25 = arith.subf %22, %24 : vector<8x8xf32>
    %cst_19 = arith.constant 0.000000e+00 : f32
    %26 = vector.broadcast %cst_19 : f32 to vector<8x8xf32>
    %27 = arith.maximumf %25, %26 : vector<8x8xf32>
    %28 = math.sqrt %27 : vector<8x8xf32>
    %cst_20 = arith.constant 1.000000e+00 : f32
    %29 = vector.broadcast %cst_20 : f32 to vector<8x8xf32>
    %30 = arith.addf %29, %28 : vector<8x8xf32>
    %31 = tpu.reciprocal %30 {approx = true} : vector<8x8xf32> -> vector<8x8xf32>
    %cst_21 = arith.constant 1.000000e+00 : f32
    %32 = vector.broadcast %cst_21 : f32 to vector<8x8xf32>
    %33 = arith.subf %31, %32 : vector<8x8xf32>
    %cst_22 = arith.constant 1.000000e+01 : f32
    %34 = vector.broadcast %cst_22 : f32 to vector<8x8xf32>
    %35 = arith.mulf %33, %34 : vector<8x8xf32>
    %36 = arith.mulf %35, %4 : vector<8x8xf32>
    %37 = vector.broadcast %12 : vector<8x1xf32> to vector<8x8xf32>
    %38 = vector.broadcast %16 : vector<1x8xf32> to vector<8x8xf32>
    %39 = arith.addf %37, %38 : vector<8x8xf32>
    %cst_23 = arith.constant 2.000000e+00 : f32
    %40 = vector.broadcast %cst_23 : f32 to vector<8x8xf32>
    %41 = arith.mulf %40, %18 : vector<8x8xf32>
    %42 = arith.subf %39, %41 : vector<8x8xf32>
    %cst_24 = arith.constant 0.000000e+00 : f32
    %43 = vector.broadcast %cst_24 : f32 to vector<8x8xf32>
    %44 = arith.maximumf %42, %43 : vector<8x8xf32>
    %45 = math.sqrt %44 : vector<8x8xf32>
    %cst_25 = arith.constant 1.000000e+00 : f32
    %46 = vector.broadcast %cst_25 : f32 to vector<8x8xf32>
    %47 = arith.addf %46, %45 : vector<8x8xf32>
    %48 = tpu.reciprocal %47 {approx = true} : vector<8x8xf32> -> vector<8x8xf32>
    %cst_26 = arith.constant 1.000000e+00 : f32
    %49 = vector.broadcast %cst_26 : f32 to vector<8x8xf32>
    %50 = arith.subf %48, %49 : vector<8x8xf32>
    %cst_27 = arith.constant 1.000000e+01 : f32
    %51 = vector.broadcast %cst_27 : f32 to vector<8x8xf32>
    %52 = arith.mulf %50, %51 : vector<8x8xf32>
    %53 = arith.mulf %52, %4 : vector<8x8xf32>
    %54 = vector.broadcast %10 : vector<8x1xf32> to vector<8x8xf32>
    %55 = vector.broadcast %16 : vector<1x8xf32> to vector<8x8xf32>
    %56 = arith.addf %54, %55 : vector<8x8xf32>
    %cst_28 = arith.constant 2.000000e+00 : f32
    %57 = vector.broadcast %cst_28 : f32 to vector<8x8xf32>
    %58 = arith.mulf %57, %19 : vector<8x8xf32>
    %59 = arith.subf %56, %58 : vector<8x8xf32>
    %cst_29 = arith.constant 0.000000e+00 : f32
    %60 = vector.broadcast %cst_29 : f32 to vector<8x8xf32>
    %61 = arith.maximumf %59, %60 : vector<8x8xf32>
    %62 = math.sqrt %61 : vector<8x8xf32>
    %cst_30 = arith.constant 1.000000e+00 : f32
    %63 = vector.broadcast %cst_30 : f32 to vector<8x8xf32>
    %64 = arith.addf %63, %62 : vector<8x8xf32>
    %65 = tpu.reciprocal %64 {approx = true} : vector<8x8xf32> -> vector<8x8xf32>
    %cst_31 = arith.constant 1.000000e+00 : f32
    %66 = vector.broadcast %cst_31 : f32 to vector<8x8xf32>
    %67 = arith.subf %65, %66 : vector<8x8xf32>
    %cst_32 = arith.constant 1.000000e+01 : f32
    %68 = vector.broadcast %cst_32 : f32 to vector<8x8xf32>
    %69 = arith.mulf %67, %68 : vector<8x8xf32>
    %70 = math.exp %36 : vector<8x8xf32>
    %71 = math.exp %53 : vector<8x8xf32>
    %72 = math.exp %69 : vector<8x8xf32>
    %cst_33 = arith.constant dense<0.000000e+00> : vector<8xf32>
    %73 = vector.multi_reduction <add>, %70, %cst_33 [1] : vector<8x8xf32> to vector<8xf32>
    %74 = vector.shape_cast %73 : vector<8xf32> to vector<8x1xf32>
    %cst_34 = arith.constant dense<0.000000e+00> : vector<8xf32>
    %75 = vector.multi_reduction <add>, %72, %cst_34 [1] : vector<8x8xf32> to vector<8xf32>
    %76 = vector.shape_cast %75 : vector<8xf32> to vector<8x1xf32>
    %77 = arith.addf %74, %76 : vector<8x1xf32>
    %cst_35 = arith.constant 1.000000e+00 : f32
    %78 = vector.broadcast %cst_35 : f32 to vector<8x1xf32>
    %79 = arith.subf %77, %78 : vector<8x1xf32>
    %cst_36 = arith.constant dense<0.000000e+00> : vector<8xf32>
    %80 = vector.multi_reduction <add>, %71, %cst_36 [0] : vector<8x8xf32> to vector<8xf32>
    %81 = vector.shape_cast %80 : vector<8xf32> to vector<1x8xf32>
    %cst_37 = arith.constant dense<0.000000e+00> : vector<8xf32>
    %82 = vector.multi_reduction <add>, %72, %cst_37 [0] : vector<8x8xf32> to vector<8xf32>
    %83 = vector.shape_cast %82 : vector<8xf32> to vector<1x8xf32>
    %84 = arith.addf %81, %83 : vector<1x8xf32>
    %cst_38 = arith.constant 1.000000e+00 : f32
    %85 = vector.broadcast %cst_38 : f32 to vector<1x8xf32>
    %86 = arith.subf %84, %85 : vector<1x8xf32>
    %87 = vector.shape_cast %36 : vector<8x8xf32> to vector<1x8x8xf32>
    %cst_39 = arith.constant dense<0.000000e+00> : vector<1xf32>
    %88 = vector.multi_reduction <add>, %87, %cst_39 [1, 2] : vector<1x8x8xf32> to vector<1xf32>
    %89 = vector.shape_cast %88 : vector<1xf32> to vector<1x1x1xf32>
    %90 = vector.extract %89[0, 0, 0] : f32 from vector<1x1x1xf32>
    %91 = vector.shape_cast %53 : vector<8x8xf32> to vector<1x8x8xf32>
    %cst_40 = arith.constant dense<0.000000e+00> : vector<1xf32>
    %92 = vector.multi_reduction <add>, %91, %cst_40 [1, 2] : vector<1x8x8xf32> to vector<1xf32>
    %93 = vector.shape_cast %92 : vector<1xf32> to vector<1x1x1xf32>
    %94 = vector.extract %93[0, 0, 0] : f32 from vector<1x1x1xf32>
    %95 = arith.addf %90, %94 : f32
    %96 = vector.shape_cast %69 : vector<8x8xf32> to vector<1x8x8xf32>
    %cst_41 = arith.constant dense<0.000000e+00> : vector<1xf32>
    %97 = vector.multi_reduction <add>, %96, %cst_41 [1, 2] : vector<1x8x8xf32> to vector<1xf32>
    %98 = vector.shape_cast %97 : vector<1xf32> to vector<1x1x1xf32>
    %99 = vector.extract %98[0, 0, 0] : f32 from vector<1x1x1xf32>
    %cst_42 = arith.constant 2.000000e+00 : f32
    %100 = arith.mulf %cst_42, %99 : f32
    %101 = arith.addf %95, %100 : f32
    %102 = math.log %79 : vector<8x1xf32>
    %103 = vector.shape_cast %102 : vector<8x1xf32> to vector<1x8x1xf32>
    %cst_43 = arith.constant dense<0.000000e+00> : vector<1xf32>
    %104 = vector.multi_reduction <add>, %103, %cst_43 [1, 2] : vector<1x8x1xf32> to vector<1xf32>
    %105 = vector.shape_cast %104 : vector<1xf32> to vector<1x1x1xf32>
    %106 = vector.extract %105[0, 0, 0] : f32 from vector<1x1x1xf32>
    %107 = math.log %86 : vector<1x8xf32>
    %108 = vector.shape_cast %107 : vector<1x8xf32> to vector<1x1x8xf32>
    %cst_44 = arith.constant dense<0.000000e+00> : vector<1xf32>
    %109 = vector.multi_reduction <add>, %108, %cst_44 [1, 2] : vector<1x1x8xf32> to vector<1xf32>
    %110 = vector.shape_cast %109 : vector<1xf32> to vector<1x1x1xf32>
    %111 = vector.extract %110[0, 0, 0] : f32 from vector<1x1x1xf32>
    %112 = arith.addf %106, %111 : f32
    %cst_45 = arith.constant 1.500000e+01 : f32
    %113 = arith.mulf %cst_45, %112 : f32
    %114 = arith.subf %101, %113 : f32
    %cst_46 = arith.constant -0.00416666688 : f32
    %115 = arith.mulf %cst_46, %114 : f32
    %cst_47 = arith.constant 0.000000e+00 : f32
    %116 = arith.addf %cst_47, %115 : f32
    %c0_48 = arith.constant 0 : index
    %c0_49 = arith.constant 0 : index
    %c0_50 = arith.constant 0 : index
    %117 = vector.load %arg1[%c0_48, %c0_49, %c0_50] : memref<3x8x128xf32, #tpu.memory_space<vmem>>, vector<1x8x128xf32>
    %118 = vector.shape_cast %117 : vector<1x8x128xf32> to vector<8x128xf32>
    %c2 = arith.constant 2 : index
    %c0_51 = arith.constant 0 : index
    %c0_52 = arith.constant 0 : index
    %119 = vector.load %arg1[%c2, %c0_51, %c0_52] : memref<3x8x128xf32, #tpu.memory_space<vmem>>, vector<1x8x128xf32>
    %120 = vector.shape_cast %119 : vector<1x8x128xf32> to vector<8x128xf32>
    %c0_53 = arith.constant 0 : index
    %c0_54 = arith.constant 0 : index
    %c0_55 = arith.constant 0 : index
    %121 = vector.load %arg2[%c0_53, %c0_54, %c0_55] : memref<3x8x1xf32, #tpu.memory_space<vmem>>, vector<1x8x1xf32>
    %122 = vector.shape_cast %121 : vector<1x8x1xf32> to vector<8x1xf32>
    %c2_56 = arith.constant 2 : index
    %c0_57 = arith.constant 0 : index
    %c0_58 = arith.constant 0 : index
    %123 = vector.load %arg2[%c2_56, %c0_57, %c0_58] : memref<3x8x1xf32, #tpu.memory_space<vmem>>, vector<1x8x1xf32>
    %124 = vector.shape_cast %123 : vector<1x8x1xf32> to vector<8x1xf32>
    %c0_59 = arith.constant 0 : index
    %c0_60 = arith.constant 0 : index
    %c0_61 = arith.constant 0 : index
    %125 = vector.load %arg3[%c0_59, %c0_60, %c0_61] : memref<3x1x8xf32, #tpu.memory_space<vmem>>, vector<1x1x8xf32>
    %126 = vector.shape_cast %125 : vector<1x1x8xf32> to vector<1x8xf32>
    %c2_62 = arith.constant 2 : index
    %c0_63 = arith.constant 0 : index
    %c0_64 = arith.constant 0 : index
    %127 = vector.load %arg3[%c2_62, %c0_63, %c0_64] : memref<3x1x8xf32, #tpu.memory_space<vmem>>, vector<1x1x8xf32>
    %128 = vector.shape_cast %127 : vector<1x1x8xf32> to vector<1x8xf32>
    %cst_65 = arith.constant dense<0.000000e+00> : vector<8x8xf32>
    %129 = tpu.matmul %118, %118, %cst_65 {dimension_numbers = #tpu.dot_dimension_numbers<[1], [1], [0], [0], [0, 0, 1, 0], [], []>} : vector<8x128xf32>, vector<8x128xf32>, vector<8x8xf32> -> vector<8x8xf32>
    %cst_66 = arith.constant dense<0.000000e+00> : vector<8x8xf32>
    %130 = tpu.matmul %120, %120, %cst_66 {dimension_numbers = #tpu.dot_dimension_numbers<[1], [1], [0], [0], [0, 0, 1, 0], [], []>} : vector<8x128xf32>, vector<8x128xf32>, vector<8x8xf32> -> vector<8x8xf32>
    %cst_67 = arith.constant dense<0.000000e+00> : vector<8x8xf32>
    %131 = tpu.matmul %118, %120, %cst_67 {dimension_numbers = #tpu.dot_dimension_numbers<[1], [1], [0], [0], [0, 0, 1, 0], [], []>} : vector<8x128xf32>, vector<8x128xf32>, vector<8x8xf32> -> vector<8x8xf32>
    %132 = vector.broadcast %122 : vector<8x1xf32> to vector<8x8xf32>
    %133 = vector.broadcast %126 : vector<1x8xf32> to vector<8x8xf32>
    %134 = arith.addf %132, %133 : vector<8x8xf32>
    %cst_68 = arith.constant 2.000000e+00 : f32
    %135 = vector.broadcast %cst_68 : f32 to vector<8x8xf32>
    %136 = arith.mulf %135, %129 : vector<8x8xf32>
    %137 = arith.subf %134, %136 : vector<8x8xf32>
    %cst_69 = arith.constant 0.000000e+00 : f32
    %138 = vector.broadcast %cst_69 : f32 to vector<8x8xf32>
    %139 = arith.maximumf %137, %138 : vector<8x8xf32>
    %140 = math.sqrt %139 : vector<8x8xf32>
    %cst_70 = arith.constant 1.000000e+00 : f32
    %141 = vector.broadcast %cst_70 : f32 to vector<8x8xf32>
    %142 = arith.addf %141, %140 : vector<8x8xf32>
    %143 = tpu.reciprocal %142 {approx = true} : vector<8x8xf32> -> vector<8x8xf32>
    %cst_71 = arith.constant 1.000000e+00 : f32
    %144 = vector.broadcast %cst_71 : f32 to vector<8x8xf32>
    %145 = arith.subf %143, %144 : vector<8x8xf32>
    %cst_72 = arith.constant 1.000000e+01 : f32
    %146 = vector.broadcast %cst_72 : f32 to vector<8x8xf32>
    %147 = arith.mulf %145, %146 : vector<8x8xf32>
    %148 = arith.mulf %147, %4 : vector<8x8xf32>
    %149 = vector.broadcast %124 : vector<8x1xf32> to vector<8x8xf32>
    %150 = vector.broadcast %128 : vector<1x8xf32> to vector<8x8xf32>
    %151 = arith.addf %149, %150 : vector<8x8xf32>
    %cst_73 = arith.constant 2.000000e+00 : f32
    %152 = vector.broadcast %cst_73 : f32 to vector<8x8xf32>
    %153 = arith.mulf %152, %130 : vector<8x8xf32>
    %154 = arith.subf %151, %153 : vector<8x8xf32>
    %cst_74 = arith.constant 0.000000e+00 : f32
    %155 = vector.broadcast %cst_74 : f32 to vector<8x8xf32>
    %156 = arith.maximumf %154, %155 : vector<8x8xf32>
    %157 = math.sqrt %156 : vector<8x8xf32>
    %cst_75 = arith.constant 1.000000e+00 : f32
    %158 = vector.broadcast %cst_75 : f32 to vector<8x8xf32>
    %159 = arith.addf %158, %157 : vector<8x8xf32>
    %160 = tpu.reciprocal %159 {approx = true} : vector<8x8xf32> -> vector<8x8xf32>
    %cst_76 = arith.constant 1.000000e+00 : f32
    %161 = vector.broadcast %cst_76 : f32 to vector<8x8xf32>
    %162 = arith.subf %160, %161 : vector<8x8xf32>
    %cst_77 = arith.constant 1.000000e+01 : f32
    %163 = vector.broadcast %cst_77 : f32 to vector<8x8xf32>
    %164 = arith.mulf %162, %163 : vector<8x8xf32>
    %165 = arith.mulf %164, %4 : vector<8x8xf32>
    %166 = vector.broadcast %122 : vector<8x1xf32> to vector<8x8xf32>
    %167 = vector.broadcast %128 : vector<1x8xf32> to vector<8x8xf32>
    %168 = arith.addf %166, %167 : vector<8x8xf32>
    %cst_78 = arith.constant 2.000000e+00 : f32
    %169 = vector.broadcast %cst_78 : f32 to vector<8x8xf32>
    %170 = arith.mulf %169, %131 : vector<8x8xf32>
    %171 = arith.subf %168, %170 : vector<8x8xf32>
    %cst_79 = arith.constant 0.000000e+00 : f32
    %172 = vector.broadcast %cst_79 : f32 to vector<8x8xf32>
    %173 = arith.maximumf %171, %172 : vector<8x8xf32>
    %174 = math.sqrt %173 : vector<8x8xf32>
    %cst_80 = arith.constant 1.000000e+00 : f32
    %175 = vector.broadcast %cst_80 : f32 to vector<8x8xf32>
    %176 = arith.addf %175, %174 : vector<8x8xf32>
    %177 = tpu.reciprocal %176 {approx = true} : vector<8x8xf32> -> vector<8x8xf32>
    %cst_81 = arith.constant 1.000000e+00 : f32
    %178 = vector.broadcast %cst_81 : f32 to vector<8x8xf32>
    %179 = arith.subf %177, %178 : vector<8x8xf32>
    %cst_82 = arith.constant 1.000000e+01 : f32
    %180 = vector.broadcast %cst_82 : f32 to vector<8x8xf32>
    %181 = arith.mulf %179, %180 : vector<8x8xf32>
    %182 = math.exp %148 : vector<8x8xf32>
    %183 = math.exp %165 : vector<8x8xf32>
    %184 = math.exp %181 : vector<8x8xf32>
    %cst_83 = arith.constant dense<0.000000e+00> : vector<8xf32>
    %185 = vector.multi_reduction <add>, %182, %cst_83 [1] : vector<8x8xf32> to vector<8xf32>
    %186 = vector.shape_cast %185 : vector<8xf32> to vector<8x1xf32>
    %cst_84 = arith.constant dense<0.000000e+00> : vector<8xf32>
    %187 = vector.multi_reduction <add>, %184, %cst_84 [1] : vector<8x8xf32> to vector<8xf32>
    %188 = vector.shape_cast %187 : vector<8xf32> to vector<8x1xf32>
    %189 = arith.addf %186, %188 : vector<8x1xf32>
    %cst_85 = arith.constant 1.000000e+00 : f32
    %190 = vector.broadcast %cst_85 : f32 to vector<8x1xf32>
    %191 = arith.subf %189, %190 : vector<8x1xf32>
    %cst_86 = arith.constant dense<0.000000e+00> : vector<8xf32>
    %192 = vector.multi_reduction <add>, %183, %cst_86 [0] : vector<8x8xf32> to vector<8xf32>
    %193 = vector.shape_cast %192 : vector<8xf32> to vector<1x8xf32>
    %cst_87 = arith.constant dense<0.000000e+00> : vector<8xf32>
    %194 = vector.multi_reduction <add>, %184, %cst_87 [0] : vector<8x8xf32> to vector<8xf32>
    %195 = vector.shape_cast %194 : vector<8xf32> to vector<1x8xf32>
    %196 = arith.addf %193, %195 : vector<1x8xf32>
    %cst_88 = arith.constant 1.000000e+00 : f32
    %197 = vector.broadcast %cst_88 : f32 to vector<1x8xf32>
    %198 = arith.subf %196, %197 : vector<1x8xf32>
    %199 = vector.shape_cast %148 : vector<8x8xf32> to vector<1x8x8xf32>
    %cst_89 = arith.constant dense<0.000000e+00> : vector<1xf32>
    %200 = vector.multi_reduction <add>, %199, %cst_89 [1, 2] : vector<1x8x8xf32> to vector<1xf32>
    %201 = vector.shape_cast %200 : vector<1xf32> to vector<1x1x1xf32>
    %202 = vector.extract %201[0, 0, 0] : f32 from vector<1x1x1xf32>
    %203 = vector.shape_cast %165 : vector<8x8xf32> to vector<1x8x8xf32>
    %cst_90 = arith.constant dense<0.000000e+00> : vector<1xf32>
    %204 = vector.multi_reduction <add>, %203, %cst_90 [1, 2] : vector<1x8x8xf32> to vector<1xf32>
    %205 = vector.shape_cast %204 : vector<1xf32> to vector<1x1x1xf32>
    %206 = vector.extract %205[0, 0, 0] : f32 from vector<1x1x1xf32>
    %207 = arith.addf %202, %206 : f32
    %208 = vector.shape_cast %181 : vector<8x8xf32> to vector<1x8x8xf32>
    %cst_91 = arith.constant dense<0.000000e+00> : vector<1xf32>
    %209 = vector.multi_reduction <add>, %208, %cst_91 [1, 2] : vector<1x8x8xf32> to vector<1xf32>
    %210 = vector.shape_cast %209 : vector<1xf32> to vector<1x1x1xf32>
    %211 = vector.extract %210[0, 0, 0] : f32 from vector<1x1x1xf32>
    %cst_92 = arith.constant 2.000000e+00 : f32
    %212 = arith.mulf %cst_92, %211 : f32
    %213 = arith.addf %207, %212 : f32
    %214 = math.log %191 : vector<8x1xf32>
    %215 = vector.shape_cast %214 : vector<8x1xf32> to vector<1x8x1xf32>
    %cst_93 = arith.constant dense<0.000000e+00> : vector<1xf32>
    %216 = vector.multi_reduction <add>, %215, %cst_93 [1, 2] : vector<1x8x1xf32> to vector<1xf32>
    %217 = vector.shape_cast %216 : vector<1xf32> to vector<1x1x1xf32>
    %218 = vector.extract %217[0, 0, 0] : f32 from vector<1x1x1xf32>
    %219 = math.log %198 : vector<1x8xf32>
    %220 = vector.shape_cast %219 : vector<1x8xf32> to vector<1x1x8xf32>
    %cst_94 = arith.constant dense<0.000000e+00> : vector<1xf32>
    %221 = vector.multi_reduction <add>, %220, %cst_94 [1, 2] : vector<1x1x8xf32> to vector<1xf32>
    %222 = vector.shape_cast %221 : vector<1xf32> to vector<1x1x1xf32>
    %223 = vector.extract %222[0, 0, 0] : f32 from vector<1x1x1xf32>
    %224 = arith.addf %218, %223 : f32
    %cst_95 = arith.constant 1.500000e+01 : f32
    %225 = arith.mulf %cst_95, %224 : f32
    %226 = arith.subf %213, %225 : f32
    %cst_96 = arith.constant -0.00416666688 : f32
    %227 = arith.mulf %cst_96, %226 : f32
    %228 = arith.addf %116, %227 : f32
    %c1_97 = arith.constant 1 : index
    %c0_98 = arith.constant 0 : index
    %c0_99 = arith.constant 0 : index
    %229 = vector.load %arg1[%c1_97, %c0_98, %c0_99] : memref<3x8x128xf32, #tpu.memory_space<vmem>>, vector<1x8x128xf32>
    %230 = vector.shape_cast %229 : vector<1x8x128xf32> to vector<8x128xf32>
    %c2_100 = arith.constant 2 : index
    %c0_101 = arith.constant 0 : index
    %c0_102 = arith.constant 0 : index
    %231 = vector.load %arg1[%c2_100, %c0_101, %c0_102] : memref<3x8x128xf32, #tpu.memory_space<vmem>>, vector<1x8x128xf32>
    %232 = vector.shape_cast %231 : vector<1x8x128xf32> to vector<8x128xf32>
    %c1_103 = arith.constant 1 : index
    %c0_104 = arith.constant 0 : index
    %c0_105 = arith.constant 0 : index
    %233 = vector.load %arg2[%c1_103, %c0_104, %c0_105] : memref<3x8x1xf32, #tpu.memory_space<vmem>>, vector<1x8x1xf32>
    %234 = vector.shape_cast %233 : vector<1x8x1xf32> to vector<8x1xf32>
    %c2_106 = arith.constant 2 : index
    %c0_107 = arith.constant 0 : index
    %c0_108 = arith.constant 0 : index
    %235 = vector.load %arg2[%c2_106, %c0_107, %c0_108] : memref<3x8x1xf32, #tpu.memory_space<vmem>>, vector<1x8x1xf32>
    %236 = vector.shape_cast %235 : vector<1x8x1xf32> to vector<8x1xf32>
    %c1_109 = arith.constant 1 : index
    %c0_110 = arith.constant 0 : index
    %c0_111 = arith.constant 0 : index
    %237 = vector.load %arg3[%c1_109, %c0_110, %c0_111] : memref<3x1x8xf32, #tpu.memory_space<vmem>>, vector<1x1x8xf32>
    %238 = vector.shape_cast %237 : vector<1x1x8xf32> to vector<1x8xf32>
    %c2_112 = arith.constant 2 : index
    %c0_113 = arith.constant 0 : index
    %c0_114 = arith.constant 0 : index
    %239 = vector.load %arg3[%c2_112, %c0_113, %c0_114] : memref<3x1x8xf32, #tpu.memory_space<vmem>>, vector<1x1x8xf32>
    %240 = vector.shape_cast %239 : vector<1x1x8xf32> to vector<1x8xf32>
    %cst_115 = arith.constant dense<0.000000e+00> : vector<8x8xf32>
    %241 = tpu.matmul %230, %230, %cst_115 {dimension_numbers = #tpu.dot_dimension_numbers<[1], [1], [0], [0], [0, 0, 1, 0], [], []>} : vector<8x128xf32>, vector<8x128xf32>, vector<8x8xf32> -> vector<8x8xf32>
    %cst_116 = arith.constant dense<0.000000e+00> : vector<8x8xf32>
    %242 = tpu.matmul %232, %232, %cst_116 {dimension_numbers = #tpu.dot_dimension_numbers<[1], [1], [0], [0], [0, 0, 1, 0], [], []>} : vector<8x128xf32>, vector<8x128xf32>, vector<8x8xf32> -> vector<8x8xf32>
    %cst_117 = arith.constant dense<0.000000e+00> : vector<8x8xf32>
    %243 = tpu.matmul %230, %232, %cst_117 {dimension_numbers = #tpu.dot_dimension_numbers<[1], [1], [0], [0], [0, 0, 1, 0], [], []>} : vector<8x128xf32>, vector<8x128xf32>, vector<8x8xf32> -> vector<8x8xf32>
    %244 = vector.broadcast %234 : vector<8x1xf32> to vector<8x8xf32>
    %245 = vector.broadcast %238 : vector<1x8xf32> to vector<8x8xf32>
    %246 = arith.addf %244, %245 : vector<8x8xf32>
    %cst_118 = arith.constant 2.000000e+00 : f32
    %247 = vector.broadcast %cst_118 : f32 to vector<8x8xf32>
    %248 = arith.mulf %247, %241 : vector<8x8xf32>
    %249 = arith.subf %246, %248 : vector<8x8xf32>
    %cst_119 = arith.constant 0.000000e+00 : f32
    %250 = vector.broadcast %cst_119 : f32 to vector<8x8xf32>
    %251 = arith.maximumf %249, %250 : vector<8x8xf32>
    %252 = math.sqrt %251 : vector<8x8xf32>
    %cst_120 = arith.constant 1.000000e+00 : f32
    %253 = vector.broadcast %cst_120 : f32 to vector<8x8xf32>
    %254 = arith.addf %253, %252 : vector<8x8xf32>
    %255 = tpu.reciprocal %254 {approx = true} : vector<8x8xf32> -> vector<8x8xf32>
    %cst_121 = arith.constant 1.000000e+00 : f32
    %256 = vector.broadcast %cst_121 : f32 to vector<8x8xf32>
    %257 = arith.subf %255, %256 : vector<8x8xf32>
    %cst_122 = arith.constant 1.000000e+01 : f32
    %258 = vector.broadcast %cst_122 : f32 to vector<8x8xf32>
    %259 = arith.mulf %257, %258 : vector<8x8xf32>
    %260 = arith.mulf %259, %4 : vector<8x8xf32>
    %261 = vector.broadcast %236 : vector<8x1xf32> to vector<8x8xf32>
    %262 = vector.broadcast %240 : vector<1x8xf32> to vector<8x8xf32>
    %263 = arith.addf %261, %262 : vector<8x8xf32>
    %cst_123 = arith.constant 2.000000e+00 : f32
    %264 = vector.broadcast %cst_123 : f32 to vector<8x8xf32>
    %265 = arith.mulf %264, %242 : vector<8x8xf32>
    %266 = arith.subf %263, %265 : vector<8x8xf32>
    %cst_124 = arith.constant 0.000000e+00 : f32
    %267 = vector.broadcast %cst_124 : f32 to vector<8x8xf32>
    %268 = arith.maximumf %266, %267 : vector<8x8xf32>
    %269 = math.sqrt %268 : vector<8x8xf32>
    %cst_125 = arith.constant 1.000000e+00 : f32
    %270 = vector.broadcast %cst_125 : f32 to vector<8x8xf32>
    %271 = arith.addf %270, %269 : vector<8x8xf32>
    %272 = tpu.reciprocal %271 {approx = true} : vector<8x8xf32> -> vector<8x8xf32>
    %cst_126 = arith.constant 1.000000e+00 : f32
    %273 = vector.broadcast %cst_126 : f32 to vector<8x8xf32>
    %274 = arith.subf %272, %273 : vector<8x8xf32>
    %cst_127 = arith.constant 1.000000e+01 : f32
    %275 = vector.broadcast %cst_127 : f32 to vector<8x8xf32>
    %276 = arith.mulf %274, %275 : vector<8x8xf32>
    %277 = arith.mulf %276, %4 : vector<8x8xf32>
    %278 = vector.broadcast %234 : vector<8x1xf32> to vector<8x8xf32>
    %279 = vector.broadcast %240 : vector<1x8xf32> to vector<8x8xf32>
    %280 = arith.addf %278, %279 : vector<8x8xf32>
    %cst_128 = arith.constant 2.000000e+00 : f32
    %281 = vector.broadcast %cst_128 : f32 to vector<8x8xf32>
    %282 = arith.mulf %281, %243 : vector<8x8xf32>
    %283 = arith.subf %280, %282 : vector<8x8xf32>
    %cst_129 = arith.constant 0.000000e+00 : f32
    %284 = vector.broadcast %cst_129 : f32 to vector<8x8xf32>
    %285 = arith.maximumf %283, %284 : vector<8x8xf32>
    %286 = math.sqrt %285 : vector<8x8xf32>
    %cst_130 = arith.constant 1.000000e+00 : f32
    %287 = vector.broadcast %cst_130 : f32 to vector<8x8xf32>
    %288 = arith.addf %287, %286 : vector<8x8xf32>
    %289 = tpu.reciprocal %288 {approx = true} : vector<8x8xf32> -> vector<8x8xf32>
    %cst_131 = arith.constant 1.000000e+00 : f32
    %290 = vector.broadcast %cst_131 : f32 to vector<8x8xf32>
    %291 = arith.subf %289, %290 : vector<8x8xf32>
    %cst_132 = arith.constant 1.000000e+01 : f32
    %292 = vector.broadcast %cst_132 : f32 to vector<8x8xf32>
    %293 = arith.mulf %291, %292 : vector<8x8xf32>
    %294 = math.exp %260 : vector<8x8xf32>
    %295 = math.exp %277 : vector<8x8xf32>
    %296 = math.exp %293 : vector<8x8xf32>
    %cst_133 = arith.constant dense<0.000000e+00> : vector<8xf32>
    %297 = vector.multi_reduction <add>, %294, %cst_133 [1] : vector<8x8xf32> to vector<8xf32>
    %298 = vector.shape_cast %297 : vector<8xf32> to vector<8x1xf32>
    %cst_134 = arith.constant dense<0.000000e+00> : vector<8xf32>
    %299 = vector.multi_reduction <add>, %296, %cst_134 [1] : vector<8x8xf32> to vector<8xf32>
    %300 = vector.shape_cast %299 : vector<8xf32> to vector<8x1xf32>
    %301 = arith.addf %298, %300 : vector<8x1xf32>
    %cst_135 = arith.constant 1.000000e+00 : f32
    %302 = vector.broadcast %cst_135 : f32 to vector<8x1xf32>
    %303 = arith.subf %301, %302 : vector<8x1xf32>
    %cst_136 = arith.constant dense<0.000000e+00> : vector<8xf32>
    %304 = vector.multi_reduction <add>, %295, %cst_136 [0] : vector<8x8xf32> to vector<8xf32>
    %305 = vector.shape_cast %304 : vector<8xf32> to vector<1x8xf32>
    %cst_137 = arith.constant dense<0.000000e+00> : vector<8xf32>
    %306 = vector.multi_reduction <add>, %296, %cst_137 [0] : vector<8x8xf32> to vector<8xf32>
    %307 = vector.shape_cast %306 : vector<8xf32> to vector<1x8xf32>
    %308 = arith.addf %305, %307 : vector<1x8xf32>
    %cst_138 = arith.constant 1.000000e+00 : f32
    %309 = vector.broadcast %cst_138 : f32 to vector<1x8xf32>
    %310 = arith.subf %308, %309 : vector<1x8xf32>
    %311 = vector.shape_cast %260 : vector<8x8xf32> to vector<1x8x8xf32>
    %cst_139 = arith.constant dense<0.000000e+00> : vector<1xf32>
    %312 = vector.multi_reduction <add>, %311, %cst_139 [1, 2] : vector<1x8x8xf32> to vector<1xf32>
    %313 = vector.shape_cast %312 : vector<1xf32> to vector<1x1x1xf32>
    %314 = vector.extract %313[0, 0, 0] : f32 from vector<1x1x1xf32>
    %315 = vector.shape_cast %277 : vector<8x8xf32> to vector<1x8x8xf32>
    %cst_140 = arith.constant dense<0.000000e+00> : vector<1xf32>
    %316 = vector.multi_reduction <add>, %315, %cst_140 [1, 2] : vector<1x8x8xf32> to vector<1xf32>
    %317 = vector.shape_cast %316 : vector<1xf32> to vector<1x1x1xf32>
    %318 = vector.extract %317[0, 0, 0] : f32 from vector<1x1x1xf32>
    %319 = arith.addf %314, %318 : f32
    %320 = vector.shape_cast %293 : vector<8x8xf32> to vector<1x8x8xf32>
    %cst_141 = arith.constant dense<0.000000e+00> : vector<1xf32>
    %321 = vector.multi_reduction <add>, %320, %cst_141 [1, 2] : vector<1x8x8xf32> to vector<1xf32>
    %322 = vector.shape_cast %321 : vector<1xf32> to vector<1x1x1xf32>
    %323 = vector.extract %322[0, 0, 0] : f32 from vector<1x1x1xf32>
    %cst_142 = arith.constant 2.000000e+00 : f32
    %324 = arith.mulf %cst_142, %323 : f32
    %325 = arith.addf %319, %324 : f32
    %326 = math.log %303 : vector<8x1xf32>
    %327 = vector.shape_cast %326 : vector<8x1xf32> to vector<1x8x1xf32>
    %cst_143 = arith.constant dense<0.000000e+00> : vector<1xf32>
    %328 = vector.multi_reduction <add>, %327, %cst_143 [1, 2] : vector<1x8x1xf32> to vector<1xf32>
    %329 = vector.shape_cast %328 : vector<1xf32> to vector<1x1x1xf32>
    %330 = vector.extract %329[0, 0, 0] : f32 from vector<1x1x1xf32>
    %331 = math.log %310 : vector<1x8xf32>
    %332 = vector.shape_cast %331 : vector<1x8xf32> to vector<1x1x8xf32>
    %cst_144 = arith.constant dense<0.000000e+00> : vector<1xf32>
    %333 = vector.multi_reduction <add>, %332, %cst_144 [1, 2] : vector<1x1x8xf32> to vector<1xf32>
    %334 = vector.shape_cast %333 : vector<1xf32> to vector<1x1x1xf32>
    %335 = vector.extract %334[0, 0, 0] : f32 from vector<1x1x1xf32>
    %336 = arith.addf %330, %335 : f32
    %cst_145 = arith.constant 1.500000e+01 : f32
    %337 = arith.mulf %cst_145, %336 : f32
    %338 = arith.subf %325, %337 : f32
    %cst_146 = arith.constant -0.00416666688 : f32
    %339 = arith.mulf %cst_146, %338 : f32
    %340 = arith.addf %228, %339 : f32
    %341 = vector.broadcast %340 : f32 to vector<8x128xf32>
    %c0_147 = arith.constant 0 : index
    %c0_148 = arith.constant 0 : index
    %342 = vector.load %arg4[%c0_147, %c0_148] : memref<8x128xf32, #tpu.memory_space<vmem>>, vector<8x128xf32>
    tpu.vector_store %arg4[%c0_147, %c0_148], %341 {strides = array<i32>} : memref<8x128xf32, #tpu.memory_space<vmem>>, vector<8x128xf32>,
    return
  }
  func.func @transform_0(%arg0: i32) -> (i32, i32, i32) {
    %c0_i32 = arith.constant 0 : i32
    %c0_i32_0 = arith.constant 0 : i32
    %c0_i32_1 = arith.constant 0 : i32
    %c0_i32_2 = arith.constant 0 : i32
    return %c0_i32, %c0_i32_0, %c0_i32_1 : i32, i32, i32
  }
  func.func @transform_1(%arg0: i32) -> (i32, i32, i32) {
    %c0_i32 = arith.constant 0 : i32
    %c0_i32_0 = arith.constant 0 : i32
    %c0_i32_1 = arith.constant 0 : i32
    %c0_i32_2 = arith.constant 0 : i32
    return %c0_i32, %c0_i32_0, %c0_i32_1 : i32, i32, i32
  }
  func.func @transform_2(%arg0: i32) -> (i32, i32, i32) {
    %c0_i32 = arith.constant 0 : i32
    %c0_i32_0 = arith.constant 0 : i32
    %c0_i32_1 = arith.constant 0 : i32
    %c0_i32_2 = arith.constant 0 : i32
    return %c0_i32, %c0_i32_0, %c0_i32_1 : i32, i32, i32
  }
  func.func @transform_3(%arg0: i32) -> (i32, i32) {
    %c0_i32 = arith.constant 0 : i32
    %c0_i32_0 = arith.constant 0 : i32
    %c0_i32_1 = arith.constant 0 : i32
    return %c0_i32, %c0_i32_0 : i32, i32
  }
}

</mosaic_0001>

<bundles_post_ra>
// kernel: tpu_custom_call.1
= control target key start
LH: loop header
LB: loop body
LE: loop exit
PB: predicated region body
PF: predicated region fallthrough
CT: control target
= control target key end

     0   :  { %v994_v2 = vmov 0.0   ;;  %s1103_s0 = inlined_call_operand.vmem [shape: f32[3,8,128], index: 0, kind: input, shape index: {}]   ;;  %s1104_s1 = inlined_call_operand.vmem [shape: f32[3,8,1], index: 1, kind: input, shape index: {}]   ;;  %s1105_s2 = inlined_call_operand.vmem [shape: f32[3,1,8], index: 2, kind: input, shape index: {}]   ;;  %s1106_s3 = inlined_call_operand.hbm [shape: f32[8,128], index: 3, kind: output, shape index: {}]  }
   0x1   :  { %v22_v0 = vld [vmem:[%s1103_s0] sm:$0xff]  ;;  %v829_v1 = vld [vmem:[%s1103_s0 + $0x8] sm:$0xff]  ;;  %862 = vmatprep.subr.mxu0 %v994_v2  ;;  %867 = vmatprep.subr.mxu1 %v994_v2 }
   0x2   :  { %863 = vmatpush3.xpose.msra.mxu0 %v22_v0  ;;  %868 = vmatpush3.xpose.msra.mxu1 %v829_v1 }
   0x3   :  { %8 = vsyncpa [#allocation3], 0  ;;  %vm995_vm0 = vmmov 0   ;;  %v839_v3 = vld [vmem:[%s1103_s0 + $0x10] sm:$0xff]  ;;  %872 = vmatprep.subr.mxu0 %v994_v2  ;;  %877 = vmatprep.subr.mxu1 %v994_v2  ;;  %v25_v4 = vld [vmem:[%s1104_s1] sm:$0xff]  ;;  %v996_v6 = vmov 0   ;;  %v15_v55 = vlaneseq }
   0x4   :  { %864 = vmatprep.mubr.msk.f32.mxu0 %vm995_vm0, %v994_v2  ;;  %869 = vmatprep.mubr.msk.f32.mxu1 %vm995_vm0, %v994_v2  ;;  %v840_v5 = vld [vmem:[%s1104_s1 + $0x10] sm:$0xff]  ;;  %v830_v7 = vld [vmem:[%s1104_s1 + $0x8] sm:$0xff]  ;;  %v832_v9 = vld [vmem:[%s1105_s2] ss:$0 sm:$0xff]  ;;  %vm316_vm14 = vcmask 64512   ;;  %vm388_vm15 = vcmask 57344  }
   0x5   :  { %865 = vmatmul.mubr.f32.vlgmr.msra.gmra.mrb[0].mxu0 %v22_v0  ;;  %870 = vmatmul.mubr.f32.vlgmr.msra.gmra.mrb[0].mxu1 %v829_v1  ;;  %v834_v10 = vld [vmem:[%s1105_s2 + $0x1] ss:$0 sm:$0xff]  ;;  %v842_v21 = vld [vmem:[%s1105_s2 + $0x2] ss:$0 sm:$0xff]  ;;  %v16_v63 = vshrl.u32 %v15_v55, 7 }
   0x6   :  { %873 = vmatpush3.xpose.msra.mxu0 %v829_v1  ;;  %878 = vmatpush3.xpose.msra.mxu1 %v839_v3 }
   0x7   :  { %874 = vmatprep.mubr.msk.f32.mxu0 %vm995_vm0, %v994_v2  ;;  %879 = vmatprep.mubr.msk.f32.mxu1 %vm995_vm0, %v994_v2 }
   0x8   :  { %882 = vmatprep.subr.mxu0 %v994_v2  ;;  %887 = vmatprep.subr.mxu1 %v994_v2 }
   0x9   :  { %875 = vmatmul.mubr.f32.vlgmr.msra.gmra.mrb[2].mxu0 %v22_v0  ;;  %880 = vmatmul.mubr.f32.vlgmr.msra.gmra.mrb[2].mxu1 %v839_v3 }
   0xa   :  { %883 = vmatpush3.xpose.msra.mxu0 %v839_v3  ;;  %888 = vmatpush3.xpose.msra.mxu1 %v839_v3 }
   0xb   :  { %884 = vmatprep.mubr.msk.f32.mxu0 %vm995_vm0, %v994_v2  ;;  %889 = vmatprep.mubr.msk.f32.mxu1 %vm995_vm0, %v994_v2  ;;  %vm375_vm0 = vcmask 7168  }
   0xc   :  { %920 = vset.pattern.permute.xlu0 %v996_v6  ;;  %921 = vset.pattern.permute.xlu1 %v996_v6 }
   0xd   :  { %885 = vmatmul.mubr.f32.vlgmr.msra.gmra.mrb[4].mxu0 %v22_v0  ;;  %890 = vmatmul.mubr.f32.vlgmr.msra.gmra.mrb[4].mxu1 %v829_v1  ;;  %v18_v0 = vand.u32 127, %v15_v55 }
   0xe   :  { %243 = vperm.xlu0 %920, %v25_v4   ;;  %552 = vperm.xlu1 %921, %v840_v5  }
   0xf   :  { %vm19_vm13 = vcmp.ne.s32.totalorder %v16_v63, %v18_v0 }
  0x12   :  { %270 = vperm.xlu0 %920, %v830_v7  }
  0x8d   :  { %v244_v8 = vpop.permute.xlu0 %243  ;;  %v553_v14 = vpop.permute.xlu1 %552 }
  0x8e   :  { %v252_v12 = vadd.f32 %v832_v9, %v244_v8  ;;  %v561_v24 = vadd.f32 %v842_v21, %v553_v14  ;;  %v295_v33 = vadd.f32 %v834_v10, %v244_v8  ;;  %v577_v36 = vadd.f32 %v842_v21, %v244_v8 }
  0x91   :  { %v271_v11 = vpop.permute.xlu0 %270 }
  0x92   :  { %v279_v13 = vadd.f32 %v834_v10, %v271_v11  ;;  %v738_v34 = vadd.f32 %v842_v21, %v271_v11 }
  0xd8   :  { %v97_v15 = vpop.f32.mrb[0].mxu0  ;;  %v167_v16 = vpop.f32.mrb[0].mxu1 }
  0xd9   :  { %v253_v17 = vmul.f32 2.0, %v97_v15  ;;  %v280_v18 = vmul.f32 2.0, %v167_v16  ;;  %v866_v19 = vpop.f32.mrb[1].mxu0  ;;  %v871_v20 = vpop.f32.mrb[1].mxu1 }
  0xdb   :  { %v254_v22 = vsub.f32 %v252_v12, %v253_v17  ;;  %v281_v23 = vsub.f32 %v279_v13, %v280_v18 }
  0xdc   :  { %v237_v25 = vpop.f32.mrb[2].mxu0  ;;  %v476_v26 = vpop.f32.mrb[2].mxu1 }
  0xdd   :  { %v255_v27 = vmax.f32 %v254_v22, 0.0  ;;  %v282_v28 = vmax.f32 %v281_v23, 0.0  ;;  %v296_v29 = vmul.f32 2.0, %v237_v25  ;;  %v562_v30 = vmul.f32 2.0, %v476_v26  ;;  %v876_v31 = vpop.f32.mrb[3].mxu0  ;;  %v881_v32 = vpop.f32.mrb[3].mxu1 }
  0xdf   :  { %922 = vrsqrt.f32 %v255_v27  ;;  %v297_v38 = vsub.f32 %v295_v33, %v296_v29  ;;  %v563_v39 = vsub.f32 %v561_v24, %v562_v30  ;;  %vm258_vm1 = vcmp.eq.f32.partialorder %v255_v27, inf }
  0xe0   :  { %924 = vrsqrt.f32 %v282_v28  ;;  %v546_v35 = vpop.f32.mrb[4].mxu0  ;;  %v734_v37 = vpop.f32.mrb[4].mxu1  ;;  %v261_v53 = vand.u32 2147483648, %v255_v27  ;;  %vm260_vm2 = vcmp.eq.f32.partialorder %v255_v27, 0.0  ;;  %vm285_vm3 = vcmp.eq.f32.partialorder %v282_v28, inf }
  0xe1   :  { %v578_v40 = vmul.f32 2.0, %v546_v35  ;;  %v739_v41 = vmul.f32 2.0, %v734_v37  ;;  %v886_v42 = vpop.f32.mrb[5].mxu0  ;;  %v891_v43 = vpop.f32.mrb[5].mxu1  ;;  %v298_v44 = vmax.f32 %v297_v38, 0.0  ;;  %v564_v45 = vmax.f32 %v563_v39, 0.0 }
  0xe2   :  { %v288_v57 = vand.u32 2147483648, %v282_v28  ;;  %vm287_vm4 = vcmp.eq.f32.partialorder %v282_v28, 0.0  ;;  %v828_v29 = vsel %vm19_vm13, 1.0, %v994_v2 }
  0xe3   :  { %v579_v46 = vsub.f32 %v577_v36, %v578_v40  ;;  %v740_v47 = vsub.f32 %v738_v34, %v739_v41  ;;  %926 = vrsqrt.f32 %v298_v44  ;;  %vm301_vm5 = vcmp.eq.f32.partialorder %v298_v44, inf }
  0xe4   :  { %928 = vrsqrt.f32 %v564_v45  ;;  %vm303_vm6 = vcmp.eq.f32.partialorder %v298_v44, 0.0  ;;  %v304_v5 = vand.u32 2147483648, %v298_v44  ;;  %vm567_vm7 = vcmp.eq.f32.partialorder %v564_v45, inf }
  0xe5   :  { %v580_v48 = vmax.f32 %v579_v46, 0.0  ;;  %v741_v49 = vmax.f32 %v740_v47, 0.0  ;;  %vm569_vm9 = vcmp.eq.f32.partialorder %v564_v45, 0.0  ;;  %v570_v9 = vand.u32 2147483648, %v564_v45 }
  0xe7   :  { %930 = vrsqrt.f32 %v580_v48  ;;  %vm583_vm8 = vcmp.eq.f32.partialorder %v580_v48, inf  ;;  %vm585_vm10 = vcmp.eq.f32.partialorder %v580_v48, 0.0  ;;  %v586_v14 = vand.u32 2147483648, %v580_v48 }
  0xe8   :  { %932 = vrsqrt.f32 %v741_v49  ;;  %vm744_vm11 = vcmp.eq.f32.partialorder %v741_v49, inf  ;;  %v747_v19 = vand.u32 2147483648, %v741_v49  ;;  %vm746_vm12 = vcmp.eq.f32.partialorder %v741_v49, 0.0 }
  0xe9   :  { %v923_v50 = vpop.eup %922 }
  0xea   :  { %v925_v51 = vpop.eup %924  ;;  %v257_v52 = vmul.f32 %v923_v50, %v255_v27 }
  0xeb   :  { %v284_v54 = vmul.f32 %v925_v51, %v282_v28 }
  0xec   :  { %v259_v56 = vsel %vm258_vm1, %v255_v27, %v257_v52 }
  0xed   :  { %v286_v58 = vsel %vm285_vm3, %v282_v28, %v284_v54  ;;  %v262_v59 = vsel %vm260_vm2, %v261_v53, %v259_v56  ;;  %v927_v62 = vpop.eup %926 }
  0xee   :  { %v263_v60 = vadd.f32 1.0, %v262_v59  ;;  %v289_v61 = vsel %vm287_vm4, %v288_v57, %v286_v58  ;;  %v929_v3 = vpop.eup %928  ;;  %v300_v4 = vmul.f32 %v927_v62, %v298_v44 }
  0xef   :  { %v290_v1 = vadd.f32 1.0, %v289_v61  ;;  %v566_v6 = vmul.f32 %v929_v3, %v564_v45 }
  0xf0   :  { %934 = vrcp.f32 %v263_v60  ;;  %v302_v8 = vsel %vm301_vm5, %v298_v44, %v300_v4 }
  0xf1   :  { %936 = vrcp.f32 %v290_v1  ;;  %v931_v7 = vpop.eup %930  ;;  %v305_v12 = vsel %vm303_vm6, %v304_v5, %v302_v8  ;;  %v568_v13 = vsel %vm567_vm7, %v564_v45, %v566_v6 }
  0xf2   :  { %v933_v10 = vpop.eup %932  ;;  %v582_v11 = vmul.f32 %v931_v7, %v580_v48  ;;  %v306_v16 = vadd.f32 1.0, %v305_v12  ;;  %v571_v17 = vsel %vm569_vm9, %v570_v9, %v568_v13 }
  0xf3   :  { %v743_v15 = vmul.f32 %v933_v10, %v741_v49  ;;  %v572_v20 = vadd.f32 1.0, %v571_v17 }
  0xf4   :  { %v584_v18 = vsel %vm583_vm8, %v580_v48, %v582_v11  ;;  %938 = vrcp.f32 %v306_v16 }
  0xf5   :  { %v745_v21 = vsel %vm744_vm11, %v741_v49, %v743_v15  ;;  %v587_v22 = vsel %vm585_vm10, %v586_v14, %v584_v18  ;;  %940 = vrcp.f32 %v572_v20 }
  0xf6   :  { %v588_v23 = vadd.f32 1.0, %v587_v22  ;;  %v748_v24 = vsel %vm746_vm12, %v747_v19, %v745_v21 }
  0xf7   :  { %v749_v25 = vadd.f32 1.0, %v748_v24 }
  0xf8   :  { %942 = vrcp.f32 %v588_v23 }
  0xf9   :  { %944 = vrcp.f32 %v749_v25 }
  0xfa   :  { %v935_v26 = vpop.eup %934 }
  0xfb   :  { %v937_v27 = vpop.eup %936  ;;  %v833_v28 = vadd.f32 -1.0, %v935_v26 }
  0xfc   :  { %v835_v30 = vadd.f32 -1.0, %v937_v27 }
  0xfd   :  { %v266_v31 = vmul.f32 10.0, %v833_v28 }
  0xfe   :  { %v293_v32 = vmul.f32 10.0, %v835_v30  ;;  %v939_v34 = vpop.eup %938 }
  0xff   :  { %v267_v33 = vmul.f32 %v828_v29, %v266_v31  ;;  %v941_v36 = vpop.eup %940  ;;  %v836_v38 = vadd.f32 -1.0, %v939_v34 }
 0x100   :  { %v1064_v35 = vmul.f32 %v828_v29, %v293_v32  ;;  %v843_v40 = vadd.f32 -1.0, %v941_v36 }
 0x101   :  { %v310_v37 = vmul.f32 1.442695, %v267_v33  ;;  %v309_v42 = vmul.f32 10.0, %v836_v38  ;;  %v340_v7 = vsel %vm316_vm14, %v267_v33, 0.0 }
 0x102   :  { %v312_v39 = vmul.f32 1.442695, %v1064_v35  ;;  %v943_v41 = vpop.eup %942  ;;  %v575_v2 = vmul.f32 10.0, %v843_v40  ;;  %v350_v28 = vsel %vm316_vm14, %v1064_v35, 0.0 }
 0x103   :  { %946 = vpow2.f32 %v310_v37  ;;  %v945_v43 = vpop.eup %944  ;;  %v844_v44 = vadd.f32 -1.0, %v943_v41  ;;  %v314_v45 = vmul.f32 1.442695, %v309_v42  ;;  %v361_v18 = vsel %vm316_vm14, %v309_v42, 0.0 }
 0x104   :  { %948 = vpow2.f32 %v312_v39  ;;  %v847_v46 = vadd.f32 -1.0, %v945_v43  ;;  %v1067_v48 = vmul.f32 %v828_v29, %v575_v2 }
 0x105   :  { %v591_v47 = vmul.f32 10.0, %v844_v44  ;;  %950 = vpow2.f32 %v314_v45 }
 0x106   :  { %v1069_v49 = vmul.f32 10.0, %v847_v46  ;;  %v592_v51 = vmul.f32 1.442695, %v1067_v48  ;;  %v616_v38 = vsel %vm316_vm14, %v1067_v48, 0.0 }
 0x107   :  { %v594_v50 = vmul.f32 1.442695, %v591_v47  ;;  %v627_v29 = vsel %vm316_vm14, %v591_v47, 0.0 }
 0x108   :  { %v753_v52 = vmul.f32 1.442695, %v1069_v49  ;;  %v771_v35 = vsel %vm316_vm14, %v1069_v49, 0.0 }
 0x109   :  { %952 = vpow2.f32 %v594_v50 }
 0x10a   :  { %954 = vpow2.f32 %v753_v52 }
 0x10b   :  { %956 = vpow2.f32 %v592_v51 }
 0x10d   :  { %v947_v53 = vpop.eup %946 }
 0x10e   :  { %v949_v54 = vpop.eup %948  ;;  %v317_v55 = vsel %vm316_vm14, %v947_v53, 0.0 }
 0x10f   :  { %318 = vadd.xlane.f32.xlu1 %v317_v55  ;;  %v325_v56 = vsel %vm316_vm14, %v949_v54, 0.0  ;;  %v951_v58 = vpop.eup %950 }
 0x110   :  { %v326_v57 = vrot.slane %v325_v56, 4  ;;  %v320_v59 = vsel %vm316_vm14, %v951_v58, 0.0 }
 0x111   :  { %321 = vadd.xlane.f32.xlu0 %v320_v59  ;;  %v332_v61 = vrot.slane %v320_v59, 4 }
 0x112   :  { %v327_v60 = vadd.f32 %v326_v57, %v325_v56 }
 0x113   :  { %755 = vadd.xlane.f32.xlu1 %v325_v56  ;;  %v953_v62 = vpop.eup %952  ;;  %v333_v1 = vadd.f32 %v332_v61, %v320_v59 }
 0x114   :  { %v328_v63 = vrot.slane %v327_v60, 2  ;;  %v955_v0 = vpop.eup %954  ;;  %v596_v3 = vsel %vm316_vm14, %v953_v62, 0.0 }
 0x115   :  { %v957_v4 = vpop.eup %956  ;;  %v608_v6 = vrot.slane %v596_v3, 4  ;;  %v757_v8 = vsel %vm316_vm14, %v955_v0, 0.0  ;;  %v334_v9 = vrot.slane %v333_v1, 2  ;;  %597 = vadd.xlane.f32.xlu0 %v596_v3 }
 0x116   :  { %v329_v5 = vadd.f32 %v328_v63, %v327_v60  ;;  %v762_v10 = vrot.slane %v757_v8, 4  ;;  %v601_v11 = vsel %vm316_vm14, %v957_v4, 0.0 }
 0x117   :  { %341 = vadd.xlane.f32.xlu1 %v340_v7  ;;  %v609_v12 = vadd.f32 %v608_v6, %v596_v3  ;;  %v602_v13 = vrot.slane %v601_v11, 4  ;;  %v335_v14 = vadd.f32 %v334_v9, %v333_v1 }
 0x118   :  { %v330_v15 = vrot.slane %v329_v5, 1  ;;  %v763_v16 = vadd.f32 %v762_v10, %v757_v8 }
 0x119   :  { %v610_v17 = vrot.slane %v609_v12, 2  ;;  %v603_v19 = vadd.f32 %v602_v13, %v601_v11  ;;  %v336_v20 = vrot.slane %v335_v14, 1  ;;  %758 = vadd.xlane.f32.xlu0 %v757_v8 }
 0x11a   :  { %v764_v21 = vrot.slane %v763_v16, 2  ;;  %v331_v25 = vadd.f32 %v330_v15, %v329_v5 }
 0x11b   :  { %362 = vadd.xlane.f32.xlu1 %v361_v18  ;;  %v611_v22 = vadd.f32 %v610_v17, %v609_v12  ;;  %v604_v23 = vrot.slane %v603_v19, 2  ;;  %v337_v24 = vadd.f32 %v336_v20, %v335_v14 }
 0x11c   :  { %v765_v26 = vadd.f32 %v764_v21, %v763_v16 }
 0x11d   :  { %v612_v27 = vrot.slane %v611_v22, 1  ;;  %v605_v30 = vadd.f32 %v604_v23, %v603_v19  ;;  %351 = vadd.xlane.f32.xlu0 %v350_v28  ;;  %v338_v32 = vadd.f32 %v337_v24, %v331_v25 }
 0x11e   :  { %v766_v31 = vrot.slane %v765_v26, 1 }
 0x11f   :  { %628 = vadd.xlane.f32.xlu1 %v627_v29  ;;  %v613_v33 = vadd.f32 %v612_v27, %v611_v22  ;;  %v606_v34 = vrot.slane %v605_v30, 1  ;;  %v838_v37 = vadd.f32 -1.0, %v338_v32 }
 0x120   :  { %v767_v36 = vadd.f32 %v766_v31, %v765_v26 }
 0x121   :  { %v607_v39 = vadd.f32 %v606_v34, %v605_v30  ;;  %617 = vadd.xlane.f32.xlu0 %v616_v38  ;;  %958 = vlog2.f32 %v838_v37 }
 0x123   :  { %v614_v40 = vadd.f32 %v613_v33, %v607_v39  ;;  %v768_v41 = vadd.f32 %v767_v36, %v607_v39 }
 0x125   :  { %v846_v42 = vadd.f32 -1.0, %v614_v40  ;;  %v849_v43 = vadd.f32 -1.0, %v768_v41  ;;  %772 = vadd.xlane.f32.xlu0 %v771_v35 }
 0x127   :  { %960 = vlog2.f32 %v846_v42 }
 0x128   :  { %962 = vlog2.f32 %v849_v43 }
 0x12b   :  { %v959_v44 = vpop.eup %958 }
 0x12c   :  { %v387_v2 = vmul.f32 0.6931472, %v959_v44 }
 0x12e   :  { %v389_v45 = vsel %vm388_vm15, %v387_v2, 0.0 }
 0x12f   :  { %390 = vadd.xlane.f32.xlu1 %v389_v45 }
 0x131   :  { %v961_v46 = vpop.eup %960 }
 0x132   :  { %v963_v47 = vpop.eup %962  ;;  %v652_v48 = vmul.f32 0.6931472, %v961_v46 }
 0x133   :  { %v796_v50 = vmul.f32 0.6931472, %v963_v47 }
 0x134   :  { %v653_v51 = vsel %vm388_vm15, %v652_v48, 0.0 }
 0x135   :  { %654 = vadd.xlane.f32.xlu1 %v653_v51  ;;  %v797_v52 = vsel %vm388_vm15, %v796_v50, 0.0 }
 0x19c   :  { %v319_v53 = vpop.xlane.xlu1 %318 }
 0x19e   :  { %v322_v54 = vpop.xlane.xlu0 %321 }
 0x19f   :  { %v323_v55 = vadd.f32 %v322_v54, %v319_v53 }
 0x1a0   :  { %v756_v49 = vpop.xlane.xlu1 %755 }
 0x1a1   :  { %v837_v56 = vadd.f32 -1.0, %v323_v55 }
 0x1a2   :  { %v598_v57 = vpop.xlane.xlu0 %597 }
 0x1a3   :  { %964 = vlog2.f32 %v837_v56  ;;  %v599_v59 = vadd.f32 %v598_v57, %v319_v53 }
 0x1a4   :  { %v342_v58 = vpop.xlane.xlu1 %341 }
 0x1a5   :  { %v343_v60 = vrot.slane %v342_v58, 4  ;;  %v845_v61 = vadd.f32 -1.0, %v599_v59 }
 0x1a6   :  { %v759_v63 = vpop.xlane.xlu0 %758 }
 0x1a7   :  { %v344_v62 = vadd.f32 %v343_v60, %v342_v58  ;;  %966 = vlog2.f32 %v845_v61  ;;  %v760_v3 = vadd.f32 %v759_v63, %v756_v49 }
 0x1a8   :  { %v363_v0 = vpop.xlane.xlu1 %362 }
 0x1a9   :  { %v345_v1 = vrot.slane %v344_v62, 2  ;;  %v364_v4 = vrot.slane %v363_v0, 4  ;;  %v848_v5 = vadd.f32 -1.0, %v760_v3 }
 0x1aa   :  { %v352_v8 = vpop.xlane.xlu0 %351 }
 0x1ab   :  { %v365_v6 = vadd.f32 %v364_v4, %v363_v0  ;;  %v346_v7 = vadd.f32 %v345_v1, %v344_v62  ;;  %968 = vlog2.f32 %v848_v5  ;;  %v353_v10 = vrot.slane %v352_v8, 4 }
 0x1ac   :  { %v629_v30 = vpop.xlane.xlu1 %628 }
 0x1ad   :  { %v366_v9 = vrot.slane %v365_v6, 2  ;;  %v347_v11 = vrot.slane %v346_v7, 1  ;;  %v965_v12 = vpop.eup %964  ;;  %v354_v13 = vadd.f32 %v353_v10, %v352_v8  ;;  %v630_v38 = vrot.slane %v629_v30, 4 }
 0x1ae   :  { %v374_v14 = vmul.f32 0.6931472, %v965_v12  ;;  %v618_v31 = vpop.xlane.xlu0 %617 }
 0x1af   :  { %v348_v15 = vadd.f32 %v347_v11, %v346_v7  ;;  %v367_v16 = vadd.f32 %v366_v9, %v365_v6  ;;  %v355_v17 = vrot.slane %v354_v13, 2  ;;  %v619_v33 = vrot.slane %v618_v31, 4 }
 0x1b0   :  { %v376_v18 = vsel %vm375_vm0, %v374_v14, 0.0  ;;  %v631_v42 = vadd.f32 %v630_v38, %v629_v30 }
 0x1b1   :  { %892 = vpush %v348_v15  ;;  %v967_v19 = vpop.eup %966  ;;  %377 = vadd.xlane.f32.xlu0 %v376_v18  ;;  %v356_v20 = vadd.f32 %v355_v17, %v354_v13  ;;  %v368_v22 = vrot.slane %v367_v16, 1  ;;  %v620_v39 = vadd.f32 %v619_v33, %v618_v31 }
 0x1b2   :  { %v640_v21 = vmul.f32 0.6931472, %v967_v19  ;;  %v773_v36 = vpop.xlane.xlu0 %772  ;;  %v632_v48 = vrot.slane %v631_v42, 2 }
 0x1b3   :  { %v357_v23 = vrot.slane %v356_v20, 1  ;;  %v369_v27 = vadd.f32 %v368_v22, %v367_v16  ;;  %v774_v40 = vrot.slane %v773_v36, 4  ;;  %v621_v43 = vrot.slane %v620_v39, 2 }
 0x1b4   :  { %v641_v24 = vsel %vm375_vm0, %v640_v21, 0.0  ;;  %v633_v57 = vadd.f32 %v632_v48, %v631_v42 }
 0x1b5   :  { %v969_v25 = vpop.eup %968  ;;  %642 = vadd.xlane.f32.xlu0 %v641_v24  ;;  %v358_v26 = vadd.f32 %v357_v23, %v356_v20  ;;  %v775_v44 = vadd.f32 %v774_v40, %v773_v36  ;;  %v622_v49 = vadd.f32 %v621_v43, %v620_v39 }
 0x1b6   :  { %v784_v28 = vmul.f32 0.6931472, %v969_v25  ;;  %v634_v7 = vrot.slane %v633_v57, 1 }
 0x1b7   :  { %894 = vpush %v358_v26  ;;  %v776_v51 = vrot.slane %v775_v44, 2  ;;  %v623_v63 = vrot.slane %v622_v49, 1 }
 0x1b8   :  { %896 = vpush %v369_v27  ;;  %v785_v29 = vsel %vm375_vm0, %v784_v28, 0.0  ;;  %v635_v19 = vadd.f32 %v634_v7, %v633_v57 }
 0x1b9   :  { %798 = vadd.xlane.f32.xlu0 %v797_v52  ;;  %786 = vadd.xlane.f32.xlu1 %v785_v29  ;;  %v777_v1 = vadd.f32 %v776_v51, %v775_v44  ;;  %v624_v13 = vadd.f32 %v623_v63, %v622_v49 }
 0x1bb   :  { %v778_v18 = vrot.slane %v777_v1, 1 }
 0x1bc   :  { %v391_v32 = vpop.xlane.xlu1 %390 }
 0x1bd   :  { %v392_v34 = vrot.slane %v391_v32, 4  ;;  %v779_v24 = vadd.f32 %v778_v18, %v777_v1 }
 0x1bf   :  { %v393_v41 = vadd.f32 %v392_v34, %v391_v32 }
 0x1c1   :  { %v394_v2 = vrot.slane %v393_v41, 2 }
 0x1c2   :  { %v655_v37 = vpop.xlane.xlu1 %654 }
 0x1c3   :  { %v656_v35 = vrot.slane %v655_v37, 4  ;;  %v395_v54 = vadd.f32 %v394_v2, %v393_v41 }
 0x1c5   :  { %v657_v45 = vadd.f32 %v656_v35, %v655_v37  ;;  %v396_v62 = vrot.slane %v395_v54, 1 }
 0x1c7   :  { %v658_v52 = vrot.slane %v657_v45, 2  ;;  %v397_v12 = vadd.f32 %v396_v62, %v395_v54 }
 0x1c9   :  { %v659_v0 = vadd.f32 %v658_v52, %v657_v45 }
 0x1cb   :  { %v660_v14 = vrot.slane %v659_v0, 1 }
 0x1cd   :  { %v661_v23 = vadd.f32 %v660_v14, %v659_v0 }
 0x1e2   :  { %s893_s2 = spop %892 }
 0x1e8   :  { %s895_s28 = spop %894 }
 0x1e9   :  { %s897_s29 = spop %896  ;;  %s360_s4 = sadd.f32 %s895_s28, %s893_s2 }
 0x1ea   :  { %s371_s6 = smul.f32 2.0, %s897_s29 }
 0x1ec   :  { %s372_s13 = sadd.f32 %s371_s6, %s360_s4 }
 0x23e   :  { %v378_v46 = vpop.xlane.xlu0 %377 }
 0x23f   :  { %v379_v47 = vrot.slane %v378_v46, 4 }
 0x241   :  { %v380_v50 = vadd.f32 %v379_v47, %v378_v46 }
 0x242   :  { %v643_v53 = vpop.xlane.xlu0 %642 }
 0x243   :  { %v381_v55 = vrot.slane %v380_v50, 2  ;;  %v644_v56 = vrot.slane %v643_v53, 4 }
 0x245   :  { %v645_v58 = vadd.f32 %v644_v56, %v643_v53  ;;  %v382_v59 = vadd.f32 %v381_v55, %v380_v50 }
 0x246   :  { %v799_v60 = vpop.xlane.xlu0 %798  ;;  %v787_v61 = vpop.xlane.xlu1 %786 }
 0x247   :  { %v646_v3 = vrot.slane %v645_v58, 2  ;;  %v800_v4 = vrot.slane %v799_v60, 4  ;;  %v788_v5 = vrot.slane %v787_v61, 4  ;;  %v383_v6 = vrot.slane %v382_v59, 1 }
 0x249   :  { %v801_v8 = vadd.f32 %v800_v4, %v799_v60  ;;  %v789_v9 = vadd.f32 %v788_v5, %v787_v61  ;;  %v384_v10 = vadd.f32 %v383_v6, %v382_v59  ;;  %v647_v11 = vadd.f32 %v646_v3, %v645_v58 }
 0x24b   :  { %v802_v15 = vrot.slane %v801_v8, 2  ;;  %v790_v16 = vrot.slane %v789_v9, 2  ;;  %898 = vpush %v384_v10  ;;  %v648_v17 = vrot.slane %v647_v11, 1 }
 0x24c   :  { %900 = vpush %v397_v12 }
 0x24d   :  { %v803_v20 = vadd.f32 %v802_v15, %v801_v8  ;;  %v791_v21 = vadd.f32 %v790_v16, %v789_v9  ;;  %902 = vpush %v624_v13  ;;  %v649_v22 = vadd.f32 %v648_v17, %v647_v11 }
 0x24e   :  { %904 = vpush %v635_v19 }
 0x24f   :  { %906 = vpush %v649_v22  ;;  %v792_v25 = vrot.slane %v791_v21, 1  ;;  %v804_v26 = vrot.slane %v803_v20, 1 }
 0x250   :  { %908 = vpush %v661_v23 }
 0x251   :  { %910 = vpush %v779_v24  ;;  %v793_v27 = vadd.f32 %v792_v25, %v791_v21  ;;  %v805_v28 = vadd.f32 %v804_v26, %v803_v20 }
 0x253   :  { %912 = vpush %v793_v27 }
 0x254   :  { %914 = vpush %v805_v28 }
 0x27c   :  { %s899_s30 = spop %898 }
 0x27d   :  { %s901_s5 = spop %900 }
 0x27e   :  { %s903_s7 = spop %902  ;;  %s399_s8 = sadd.f32 %s901_s5, %s899_s30 }
 0x27f   :  { %s905_s9 = spop %904  ;;  %s626_s10 = sadd.f32 %s903_s7, %s893_s2 }
 0x280   :  { %s637_s11 = smul.f32 2.0, %s905_s9  ;;  %s907_s12 = spop %906 }
 0x281   :  { %s909_s14 = spop %908  ;;  %s400_s15 = smul.f32 15.0, %s399_s8 }
 0x282   :  { %s770_s16 = sadd.f32 %s903_s7, %s895_s28  ;;  %s911_s0 = spop %910 }
 0x283   :  { %s663_s17 = sadd.f32 %s909_s14, %s907_s12  ;;  %s781_s23 = smul.f32 2.0, %s911_s0 }
 0x284   :  { %s638_s18 = sadd.f32 %s637_s11, %s626_s10  ;;  %s913_s19 = spop %912 }
 0x285   :  { %s664_s20 = smul.f32 15.0, %s663_s17  ;;  %s915_s21 = spop %914 }
 0x286   :  { %s401_s22 = ssub.f32 %s372_s13, %s400_s15  ;;  %s997_s30 = smov [#allocation2]  }
 0x287   :  { %s665_s24 = ssub.f32 %s638_s18, %s664_s20  ;;  %s820_s4 = sshll.u32 %s997_s30, 4  ;;  %s821_s4 = int_to_ptr.vmem [resolvable:$true] %s820_s4 }
 0x288   :  { %s807_s25 = sadd.f32 %s915_s21, %s913_s19  ;;  %s402_s2 = smul.f32 -0.004166667, %s401_s22 }
 0x289   :  { %s666_s26 = smul.f32 -0.004166667, %s665_s24  ;;  %s782_s1 = sadd.f32 %s781_s23, %s770_s16 }
 0x28a   :  { %s808_s27 = smul.f32 15.0, %s807_s25  ;;  %s970_s7 = scalar_lea.vmem %s821_s4, 128 }
 0x28b   :  { %s667_s6 = sadd.f32 %s666_s26, %s402_s2  ;;  %p971_p0 = scmp.ne.s32.totalorder %s821_s4, %s970_s7 }
 0x28c   :  { %s809_s29 = ssub.f32 %s782_s1, %s808_s27  ;;  %p975_p1 = scmp.lt.s32.totalorder %s821_s4, %s821_s4 }
 0x28d   :  { %p976_p2 = scmp.lt.s32.totalorder %s970_s7, %s970_s7 }
 0x28e   :  { %s810_s5 = smul.f32 -0.004166667, %s809_s29 }
 0x28f   :  { %p977_p3 = por %p976_p2, %p975_p1 }
 0x290   :  { %s811_s28 = sadd.f32 %s810_s5, %s667_s6 }
 0x291   :  { %p978_p4 = pnand %p977_p3, %p971_p0 }
 0x292   :  { %v812_v29 = vstv %s811_s28 }
 0x293   :  { %813 = vst [vmem:[#allocation2] sm:$0xff] %v812_v29 }
 0x294   :  { %981 = shalt.err (!%p978_p4)
}
 0x295   :  { %s982_s10 = scalar_lea.hbm %s1106_s3, 128 }
 0x296   :  { %p983_p5 = scmp.ne.s32.totalorder %s1106_s3, %s982_s10  ;;  %p986_p6 = scmp.lt.u32.totalorder %s982_s10, %s1106_s3 }
 0x298   :  { %p988_p7 = pnand %p986_p6, %p983_p5 }
 0x29a   :  { %991 = shalt.err (!%p988_p7)
}
 0x29b   :  { %823 = dma.vmem_to_hbm [thread:$0]  %s821_s4, 128, %s1106_s3, [#allocation3]  }
 0x29c   :  { %992 = dma.done.wait [#allocation3], 128  }
 0x29d   :  { %993 = vsyncadd [#allocation3], 4294967168 }
 0x29e   :  { %827 = vsyncpa [#allocation3], 1 }

</bundles_post_ra>
